<compile_context>
chip_gen: v7x
topology: tpu7x:2x2x1
jax: 0.10.0
libtpu: 0.0.40
codegen_flags: <defaults>
</compile_context>

<pallas_src>
import functools

import jax
import jax.numpy as jnp
from jax.experimental import pallas as pl
from jax.experimental.pallas import tpu as pltpu

_VMEM_LIMIT = 48 * 1024 * 1024  # stay under v7x's 64 MiB physical VMEM (v5e/v6e have 128 MiB)


def _round_up(x, m):
    return ((x + m - 1) // m) * m


def _row_tile(mp, bytes_per_elem=16, budget=16 * 1024 * 1024):
    """Largest row tile (multiple of 128, divides mp) whose (tile, mp) working set fits budget."""
    cap = max(128, budget // max(1, mp * bytes_per_elem))
    for t in (1024, 512, 256, 128):
        if t <= cap and mp % t == 0:
            return t
    return 128


def _pack_keys(coords, base, nbatch):
    """Pack (x,y,z,b) into one int32 key; xyz shifted by +1 so +-1 neighbour offsets stay in-field."""
    c = coords.astype(jnp.int32)
    return ((((c[:, 0] + 1) * base + (c[:, 1] + 1)) * base + (c[:, 2] + 1)) * nbatch
            + c[:, 3]).astype(jnp.int32)


# ------------------------------------------------------------------ kernel C: voxel mean pooling
def _voxel_kernel(rk_ref, ck_ref, val_ref, out_ref, *, ones_col, tile_rows):
    rk = rk_ref[...]                                   # (TM, 1)  row keys (this tile)
    ck = ck_ref[...]                                   # (1, Mp)  all keys (lane axis)
    same = rk == ck                                    # (TM, Mp) single-key match
    # counts are folded into the matmul via the ones column; bf16 inputs, f32 accumulation.
    sums = jnp.dot(same.astype(jnp.bfloat16), val_ref[...],
                   preferred_element_type=jnp.float32)          # (TM, 128)
    counts = sums[:, ones_col:ones_col + 1]                     # exact (sum of 1.0s)
    mean = sums / counts
    mp = ck.shape[1]
    j_idx = jax.lax.broadcasted_iota(jnp.int32, (tile_rows, mp), 1)
    big = jnp.int32(2 ** 30)
    first_match = jnp.min(jnp.where(same, j_idx, big), axis=1, keepdims=True)   # (TM, 1)
    row_idx = (pl.program_id(0) * tile_rows
               + jax.lax.broadcasted_iota(jnp.int32, (tile_rows, 1), 0))
    is_first = (first_match == row_idx).astype(jnp.float32)
    # fold the first-occurrence flag into the (lane-dense) mean output, reusing the ones column
    lane = jax.lax.broadcasted_iota(jnp.int32, mean.shape, 1)
    out_ref[...] = jnp.where(lane == ones_col, is_first, mean)


def voxel_mean_pool(keys, values):
    M, V = values.shape
    VP = max(128, _round_up(V + 1, 128))               # lane-padded value width
    ones_col = V                                       # counts live here; overwritten by is_first
    Mp = _round_up(max(M, 128), 128)
    TM = _row_tile(Mp)
    pad = Mp - M

    # padded rows get unique negative keys: they never match real voxels (or each other)
    key_pad = jnp.concatenate([keys, -1 - jnp.arange(pad, dtype=jnp.int32)], axis=0)
    row_keys = key_pad[:, None]                        # (Mp, 1)
    col_keys = key_pad[None, :]                        # (1, Mp)  lane-dense

    vals = jnp.zeros((Mp, VP), jnp.float32)
    vals = vals.at[:M, :V].set(values)
    vals = vals.at[:, ones_col].set(1.0)               # ones column -> per-voxel counts
    vals_bf = vals.astype(jnp.bfloat16)                # colors lose ~3 decimal digits (see review)

    out = pl.pallas_call(
        functools.partial(_voxel_kernel, ones_col=ones_col, tile_rows=TM),
        grid=(Mp // TM,),
        out_shape=jax.ShapeDtypeStruct((Mp, VP), jnp.float32),
        in_specs=[pl.BlockSpec((TM, 1), lambda i: (i, 0)),
                  pl.BlockSpec((1, Mp), lambda i: (0, 0)),
                  pl.BlockSpec((Mp, VP), lambda i: (0, 0))],
        out_specs=pl.BlockSpec((TM, VP), lambda i: (i, 0)),
        compiler_params=pltpu.CompilerParams(
            dimension_semantics=("parallel",),
            vmem_limit_bytes=_VMEM_LIMIT),
    )(row_keys, col_keys, vals_bf)

    mean_vals = out[:M, :V]
    is_first = out[:M, ones_col] > 0.5
    return mean_vals, is_first


# ------------------------------------------------ kernel D: one-hot submanifold-conv neighbour lookup
def _neighbor_kernel(delta_ref, tgt_ref, allk_ref, out_ref):
    d = pl.program_id(0)
    tgt = tgt_ref[...] + delta_ref[d]                  # (1, TN)  shifted (packed) target keys
    allk = allk_ref[...]                               # (Mp, 1)  candidate keys (sublane axis)
    same = allk == tgt                                 # (Mp, TN)
    cand = jax.lax.broadcasted_iota(jnp.int32, same.shape, 0) + 1    # 1-based candidate index
    big = jnp.int32(2 ** 30)
    best = jnp.min(jnp.where(same, cand, big), axis=0)               # keep FIRST match (min index)
    out_ref[...] = jnp.where(best < big, best, jnp.int32(0))         # (TN,) lane-dense store


def neighbor_lookup(keys, deltas):
    M = keys.shape[0]
    D = deltas.shape[0]
    Mp = _round_up(max(M, 128), 128)
    TN = _row_tile(Mp)
    pad = Mp - M

    key_pad = jnp.concatenate([keys, -1 - jnp.arange(pad, dtype=jnp.int32)], axis=0)
    tgt_keys = key_pad[None, :]                        # (1, Mp)  points whose neighbour we look up
    all_keys = key_pad[:, None]                        # (Mp, 1)  candidate neighbours

    out = pl.pallas_call(
        _neighbor_kernel,
        grid_spec=pltpu.PrefetchScalarGridSpec(
            num_scalar_prefetch=1,                     # packed offset deltas live in SMEM
            grid=(D, Mp // TN),
            in_specs=[pl.BlockSpec((1, TN), lambda d, j, deltas: (0, j)),
                      pl.BlockSpec((Mp, 1), lambda d, j, deltas: (0, 0))],
            out_specs=pl.BlockSpec((None, TN), lambda d, j, deltas: (d, j)),
        ),
        out_shape=jax.ShapeDtypeStruct((D, Mp), jnp.int32),
        compiler_params=pltpu.CompilerParams(
            dimension_semantics=("parallel", "parallel"),
            vmem_limit_bytes=_VMEM_LIMIT),
    )(deltas, tgt_keys, all_keys)
    return out[:, :M]


# ----------------------------------------------------------------------------------- forward
def coord_augmentation_forward(coords, faces, colors, instances, key,
                               num_sampled_points=5, input_scale=16):
    coords = coords.astype(jnp.int32)
    faces = faces.astype(jnp.int32)
    N = coords.shape[0]
    C = colors.shape[-1]

    # --- large-face detection: tiny gather + elementwise, left to XLA fusion (review kernel A) ---
    v0, v1, v2 = coords[faces[:, 0]], coords[faces[:, 1]], coords[faces[:, 2]]
    edge_lengths = jnp.maximum(jnp.maximum(jnp.max(jnp.abs(v0 - v1), axis=-1),
                                           jnp.max(jnp.abs(v1 - v2), axis=-1)),
                               jnp.max(jnp.abs(v2 - v0), axis=-1))
    large_faces = faces[edge_lengths >= 2]
    Fl = int(large_faces.shape[0])
    if Fl == 0:
        return coords[0:1]
    S = num_sampled_points

    alphas = jax.random.uniform(key, (S, Fl, 3), jnp.float32)
    alphas = alphas / jnp.sum(alphas, axis=-1, keepdims=True)

    verts = jnp.stack([coords[large_faces[:, 0]], coords[large_faces[:, 1]],
                       coords[large_faces[:, 2]]], axis=1).astype(jnp.float32)   # (Fl, 3, 4)
    vcols = jnp.stack([colors[large_faces[:, 0]], colors[large_faces[:, 1]],
                       colors[large_faces[:, 2]]], axis=1).astype(jnp.float32)   # (Fl, 3, C)
    vinst = jnp.stack([instances[large_faces[:, 0]], instances[large_faces[:, 1]],
                       instances[large_faces[:, 2]]], axis=1).astype(jnp.float32)  # (Fl, 3, 1)

    # --- barycentric sampling: tiny einsums, left to XLA fusion (review kernel B) ---
    sampled_coords = jnp.round(jnp.einsum('sfk,fkd->sfd', alphas, verts)).astype(jnp.int32)
    sampled_coords = sampled_coords.reshape(-1, 4)
    sampled_colors = jnp.einsum('sfk,fkc->sfc', alphas, vcols).reshape(-1, C)
    arg = jnp.argmax(alphas, axis=-1).reshape(-1)
    row = jnp.tile(jnp.arange(Fl), S)
    sampled_instances = vinst[row, arg]                                           # (S*Fl, 1)

    K = S * Fl
    all_coords = jnp.concatenate([coords, sampled_coords], axis=0)                # (M, 4)
    all_colors = jnp.concatenate([colors.astype(jnp.float32), sampled_colors], axis=0)
    all_instances = jnp.concatenate([instances.astype(jnp.float32), sampled_instances], axis=0)
    all_flags = jnp.concatenate([-100.0 * jnp.ones((N, 1), jnp.float32),
                                 jnp.ones((K, 1), jnp.float32)], axis=0)
    all_values = jnp.concatenate([all_colors, all_instances, all_flags], axis=-1)  # (M, C+2)

    # --- packed single-int32 coordinate keys (assumes coords >= 0, as scn requires) ---
    max_c = int(jnp.max(all_coords[:, :3]))
    max_b = int(jnp.max(all_coords[:, 3]))
    base = max(input_scale, max_c + 1) + 2     # +1 shift keeps +-1 neighbour offsets in-field
    nbatch = max_b + 1
    assert base ** 3 * nbatch < 2 ** 31, "packed coordinate key would overflow int32"

    # --- scn.InputLayer(mode=4): per-voxel mean pooling + first-occurrence (Pallas kernel C) ---
    keys_all = _pack_keys(all_coords, base, nbatch)
    mean_vals, is_first = voxel_mean_pool(keys_all, all_values)
    valid = is_first & (mean_vals[:, -1] > 0)
    augmented_coords = all_coords[valid]
    valid_values = mean_vals[valid]

    # --- coord_input_layer(mode=2) + six one-hot SubmanifoldConvolutions (Pallas kernel D) ---
    all_coords2 = jnp.concatenate([coords, augmented_coords], axis=0)
    M2 = int(all_coords2.shape[0])
    keys2 = _pack_keys(all_coords2, base, nbatch)

    # one-hot 3x3x3 kernel taps 4, 22, 10, 16, 12, 14  ->  unit shifts, packed into key deltas
    kernel_hot = [4, 22, 10, 16, 12, 14]
    offs = [(k // 9 - 1, (k // 3) % 3 - 1, k % 3 - 1) for k in kernel_hot]
    deltas = jnp.asarray([((dx * base + dy) * base + dz) * nbatch for dx, dy, dz in offs],
                         dtype=jnp.int32)                                          # (6,)

    shifted = neighbor_lookup(keys2, deltas)                                       # (6, M2)
    shifted_flat = shifted.reshape(-1)
    src = jnp.tile(jnp.arange(1, M2 + 1, dtype=jnp.int32), 6)
    all_edges = jnp.stack([src, shifted_flat], axis=-1)
    # Note: the original `.max(-1)[0]` on a 1-D tensor is a global (scalar) max — reproduced.
    cond = (shifted_flat > 0) & (jnp.max(shifted_flat) > N)
    augmented_edges = all_edges[cond] - 1

    return (augmented_coords,
            valid_values[:, :C],
            jnp.round(valid_values[:, C:-1]).astype(jnp.int32),
            augmented_edges)


# ----------------------------------------------------------------------------------- main
if __name__ == "__main__":
    key = jax.random.PRNGKey(0)
    kc, kf, kcol, kinst, kalpha = jax.random.split(key, 5)

    N, F, C = 32, 16, 3
    xyz = jax.random.randint(kc, (N, 3), 0, 12, dtype=jnp.int32)
    batch_col = jnp.zeros((N, 1), jnp.int32)
    coords = jnp.concatenate([xyz, batch_col], axis=-1)                    # (N, 4)
    faces = jax.random.randint(kf, (F, 3), 0, N, dtype=jnp.int32)          # (F, 3)
    colors = jax.random.uniform(kcol, (N, C), jnp.float32)                 # (N, C)
    instances = jax.random.randint(kinst, (N, 1), 0, 3, dtype=jnp.int32)   # (N, 1)

    out = coord_augmentation_forward(coords, faces, colors, instances, key=kalpha,
                                     num_sampled_points=5, input_scale=16)
    jax.block_until_ready(out)
    print("KERNEL_OK")
</pallas_src>

<mosaic_0001>
module attributes {stable_mosaic.version = 11 : i64} {
  func.func @_voxel_kernel(%arg0: i32, %arg1: memref<128x1xi32, #tpu.memory_space<vmem>>, %arg2: memref<1x128xi32, #tpu.memory_space<vmem>>, %arg3: memref<128x128xbf16, #tpu.memory_space<vmem>>, %arg4: memref<128x128xf32, #tpu.memory_space<vmem>>) attributes {dimension_semantics = [#tpu.dimension_semantics<parallel>], iteration_bounds = array<i64: 1>, scalar_prefetch = 0 : i64, scratch_operands = 0 : i64, tpu.core_type = #tpu.core_type<tc>, window_params = [{transform_indices = @transform_0, window_bounds = array<i64: 128, 1>}, {pipeline_mode = #tpu.pipeline_mode<synchronous>, transform_indices = @transform_1, window_bounds = array<i64: 1, 128>}, {pipeline_mode = #tpu.pipeline_mode<synchronous>, transform_indices = @transform_2, window_bounds = array<i64: 128, 128>}, {transform_indices = @transform_3, window_bounds = array<i64: 128, 128>}]} {
    %c0 = arith.constant 0 : index
    %c0_0 = arith.constant 0 : index
    %0 = vector.load %arg1[%c0, %c0_0] : memref<128x1xi32, #tpu.memory_space<vmem>>, vector<128x1xi32>
    %c0_1 = arith.constant 0 : index
    %c0_2 = arith.constant 0 : index
    %1 = vector.load %arg2[%c0_1, %c0_2] : memref<1x128xi32, #tpu.memory_space<vmem>>, vector<1x128xi32>
    %2 = vector.broadcast %0 : vector<128x1xi32> to vector<128x128xi32>
    %3 = vector.broadcast %1 : vector<1x128xi32> to vector<128x128xi32>
    %4 = arith.cmpi eq, %2, %3 : vector<128x128xi32>
    %5 = arith.extui %4 : vector<128x128xi1> to vector<128x128xi32>
    %6 = arith.sitofp %5 : vector<128x128xi32> to vector<128x128xf32>
    %7 = arith.truncf %6 : vector<128x128xf32> to vector<128x128xbf16>
    %c0_3 = arith.constant 0 : index
    %c0_4 = arith.constant 0 : index
    %8 = vector.load %arg3[%c0_3, %c0_4] : memref<128x128xbf16, #tpu.memory_space<vmem>>, vector<128x128xbf16>
    %cst = arith.constant dense<0.000000e+00> : vector<128x128xf32>
    %9 = tpu.matmul %7, %8, %cst {dimension_numbers = #tpu.dot_dimension_numbers<[1], [0], [0], [1], [0, 0, 1, 1], [], []>} : vector<128x128xbf16>, vector<128x128xbf16>, vector<128x128xf32> -> vector<128x128xf32>
    %10 = vector.extract_strided_slice %9 {offsets = [0, 5], sizes = [128, 1], strides = [1, 1]} : vector<128x128xf32> to vector<128x1xf32>
    %11 = vector.broadcast %10 : vector<128x1xf32> to vector<128x128xf32>
    %12 = arith.divf %9, %11 : vector<128x128xf32>
    %13 = tpu.iota {dimensions = array<i32: 1>} : vector<128x128xi32>
    %c1073741824_i32 = arith.constant 1073741824 : i32
    %14 = vector.broadcast %c1073741824_i32 : i32 to vector<128x128xi32>
    %15 = arith.select %4, %13, %14 : vector<128x128xi1>, vector<128x128xi32>
    %cst_5 = arith.constant dense<2147483647> : vector<128xi32>
    %16 = vector.multi_reduction <minsi>, %15, %cst_5 [1] : vector<128x128xi32> to vector<128xi32>
    %17 = vector.shape_cast %16 : vector<128xi32> to vector<128x1xi32>
    %c128_i32 = arith.constant 128 : i32
    %18 = arith.muli %arg0, %c128_i32 : i32
    %19 = tpu.iota {dimensions = array<i32: 0>} : vector<128x1xi32>
    %20 = vector.broadcast %18 : i32 to vector<128x1xi32>
    %21 = arith.addi %20, %19 : vector<128x1xi32>
    %22 = arith.cmpi eq, %17, %21 : vector<128x1xi32>
    %23 = arith.extui %22 : vector<128x1xi1> to vector<128x1xi32>
    %24 = arith.sitofp %23 : vector<128x1xi32> to vector<128x1xf32>
    %25 = tpu.iota {dimensions = array<i32: 1>} : vector<128x128xi32>
    %c5_i32 = arith.constant 5 : i32
    %26 = vector.broadcast %c5_i32 : i32 to vector<128x128xi32>
    %27 = arith.cmpi eq, %25, %26 : vector<128x128xi32>
    %28 = vector.shape_cast %24 : vector<128x1xf32> to vector<128x1xf32>
    %29 = vector.broadcast %28 : vector<128x1xf32> to vector<128x128xf32>
    %30 = arith.select %27, %29, %12 : vector<128x128xi1>, vector<128x128xf32>
    %c0_6 = arith.constant 0 : index
    %c0_7 = arith.constant 0 : index
    %31 = vector.load %arg4[%c0_6, %c0_7] : memref<128x128xf32, #tpu.memory_space<vmem>>, vector<128x128xf32>
    tpu.vector_store %arg4[%c0_6, %c0_7], %30 {strides = array<i32>} : memref<128x128xf32, #tpu.memory_space<vmem>>, vector<128x128xf32>,
    return
  }
  func.func @transform_0(%arg0: i32) -> (i32, i32) {
    %c0_i32 = arith.constant 0 : i32
    %c0_i32_0 = arith.constant 0 : i32
    return %arg0, %c0_i32 : i32, i32
  }
  func.func @transform_1(%arg0: i32) -> (i32, i32) {
    %c0_i32 = arith.constant 0 : i32
    %c0_i32_0 = arith.constant 0 : i32
    %c0_i32_1 = arith.constant 0 : i32
    return %c0_i32, %c0_i32_0 : i32, i32
  }
  func.func @transform_2(%arg0: i32) -> (i32, i32) {
    %c0_i32 = arith.constant 0 : i32
    %c0_i32_0 = arith.constant 0 : i32
    %c0_i32_1 = arith.constant 0 : i32
    return %c0_i32, %c0_i32_0 : i32, i32
  }
  func.func @transform_3(%arg0: i32) -> (i32, i32) {
    %c0_i32 = arith.constant 0 : i32
    %c0_i32_0 = arith.constant 0 : i32
    return %arg0, %c0_i32 : i32, i32
  }
}

</mosaic_0001>

<bundles_post_ra>
// kernel: tpu_custom_call.1
= control target key start
LH: loop header
LB: loop body
LE: loop exit
PB: predicated region body
PF: predicated region fallthrough
CT: control target
= control target key end

     0   :  { %v984_v2 = vmov 0   ;;  %s1538_s0 = inlined_call_operand.vmem [shape: s32[128,1], index: 0, kind: input, shape index: {}]   ;;  %s1539_s1 = inlined_call_operand.vmem [shape: s32[1,128], index: 1, kind: input, shape index: {}]   ;;  %s1540_s2 = inlined_call_operand.vmem [shape: bf16[128,128], index: 2, kind: input, shape index: {}]   ;;  %s1541_s3 = inlined_call_operand.hbm [shape: f32[128,128], index: 3, kind: output, shape index: {}]  }
   0x1   :  { %v24_v0 = vld [vmem:[%s1538_s0 + $0x40] sm:$0xff]  ;;  %917 = vset.pattern.permute.xlu1 %v984_v2  ;;  %916 = vset.pattern.permute.xlu0 %v984_v2  ;;  %v25_v3 = vld [vmem:[%s1538_s0 + $0x48] sm:$0xff]  ;;  %v19_v5 = vld [vmem:[%s1538_s0 + $0x18] sm:$0xff] }
   0x2   :  { %v16_v1 = vld [vmem:[%s1538_s0] sm:$0xff]  ;;  %58 = vperm.xlu1 %917, %v24_v0   ;;  %v17_v4 = vld [vmem:[%s1538_s0 + $0x8] sm:$0xff]  ;;  %v18_v6 = vld [vmem:[%s1538_s0 + $0x10] sm:$0xff] }
   0x3   :  { %34 = vperm.xlu0 %916, %v16_v1   ;;  %v920_v7 = vld [vmem:[%s1540_s2] sm:$0xff]   ;;  %v921_v8 = vld [vmem:[%s1540_s2 + $0x8] sm:$0xff]   ;;  %v27_v9 = vld [vmem:[%s1538_s0 + $0x58] sm:$0xff] }
   0x4   :  { %861 = vmatprep.subr.bf16.mxu0 %v920_v7  ;;  %893 = vmatprep.subr.bf16.mxu1 %v920_v7  ;;  %v26_v10 = vld [vmem:[%s1538_s0 + $0x50] sm:$0xff] }
   0x5   :  { %862 = vmatpush3.bf16.msra.mxu0 %v920_v7  ;;  %901 = vmatpush3.bf16.msra.mxu1 %v920_v7  ;;  %v922_v11 = vld [vmem:[%s1540_s2 + $0x10] sm:$0xff]  }
   0x6   :  { %61 = vperm.xlu1 %917, %v25_v3   ;;  %863 = vmatprep.subr.bf16.mxu0 %v921_v8 }
   0x7   :  { %37 = vperm.xlu0 %916, %v17_v4   ;;  %894 = vmatprep.subr.bf16.mxu1 %v921_v8 }
   0x9   :  { %864 = vmatpush3.bf16.msra.mxu0 %v921_v8  ;;  %902 = vmatpush3.bf16.msra.mxu1 %v921_v8 }
   0xa   :  { %43 = vperm.xlu1 %917, %v19_v5  }
   0xb   :  { %40 = vperm.xlu0 %916, %v18_v6  }
   0xe   :  { %67 = vperm.xlu1 %917, %v27_v9  }
   0xf   :  { %64 = vperm.xlu0 %916, %v26_v10  }
  0x10   :  { %8 = vsyncpa [#allocation3], 0  ;;  %v21_v12 = vld [vmem:[%s1538_s0 + $0x28] sm:$0xff]  ;;  %v20_v13 = vld [vmem:[%s1538_s0 + $0x20] sm:$0xff]  ;;  %865 = vmatprep.subr.bf16.mxu0 %v922_v11  ;;  %895 = vmatprep.subr.bf16.mxu1 %v922_v11  ;;  %v414_v25 = vlaneseq  ;;  %v985_v36 = vmov 1.0|1.0  }
  0x11   :  { %v923_v14 = vld [vmem:[%s1540_s2 + $0x18] sm:$0xff]   ;;  %866 = vmatpush3.bf16.msra.mxu0 %v922_v11  ;;  %903 = vmatpush3.bf16.msra.mxu1 %v922_v11  ;;  %v29_v15 = vld [vmem:[%s1538_s0 + $0x68] sm:$0xff]  ;;  %v28_v16 = vld [vmem:[%s1538_s0 + $0x60] sm:$0xff] }
  0x12   :  { %49 = vperm.xlu1 %917, %v21_v12   ;;  %867 = vmatprep.subr.bf16.mxu0 %v923_v14  ;;  %v924_v17 = vld [vmem:[%s1540_s2 + $0x20] sm:$0xff]   ;;  %v23_v18 = vld [vmem:[%s1538_s0 + $0x38] sm:$0xff]  ;;  %v22_v19 = vld [vmem:[%s1538_s0 + $0x30] sm:$0xff]  ;;  %v1089_v27 = vand.u32 127, %v414_v25 }
  0x13   :  { %46 = vperm.xlu0 %916, %v20_v13   ;;  %896 = vmatprep.subr.bf16.mxu1 %v923_v14  ;;  %v925_v20 = vld [vmem:[%s1540_s2 + $0x28] sm:$0xff]   ;;  %v31_v21 = vld [vmem:[%s1538_s0 + $0x78] sm:$0xff]  ;;  %v30_v22 = vld [vmem:[%s1538_s0 + $0x70] sm:$0xff] }
  0x14   :  { %v926_v23 = vld [vmem:[%s1540_s2 + $0x30] sm:$0xff]   ;;  %v927_v24 = vld [vmem:[%s1540_s2 + $0x38] sm:$0xff]   ;;  %v1086_v26 = vld [vmem:[%s1539_s1] ss:$0 sm:$0xff]  ;;  %s988_s1 = smov [#allocation2]  }
  0x15   :  { %868 = vmatpush3.bf16.msra.mxu0 %v923_v14  ;;  %904 = vmatpush3.bf16.msra.mxu1 %v923_v14  ;;  %s777_s2 = sshll.u32 %s988_s1, 4  ;;  %s778_s2 = int_to_ptr.vmem [resolvable:$true] %s777_s2 }
  0x16   :  { %73 = vperm.xlu1 %917, %v29_v15   ;;  %869 = vmatprep.subr.bf16.mxu0 %v924_v17  ;;  %s960_s7 = scalar_lea.vmem %s778_s2, 2048  ;;  %p965_p1 = scmp.lt.s32.totalorder %s778_s2, %s778_s2 }
  0x17   :  { %70 = vperm.xlu0 %916, %v28_v16   ;;  %897 = vmatprep.subr.bf16.mxu1 %v924_v17  ;;  %p961_p0 = scmp.ne.s32.totalorder %s778_s2, %s960_s7  ;;  %p966_p2 = scmp.lt.s32.totalorder %s960_s7, %s960_s7 }
  0x19   :  { %870 = vmatpush3.bf16.msra.mxu0 %v924_v17  ;;  %905 = vmatpush3.bf16.msra.mxu1 %v924_v17  ;;  %p967_p3 = por %p966_p2, %p965_p1 }
  0x1a   :  { %55 = vperm.xlu1 %917, %v23_v18   ;;  %871 = vmatprep.subr.bf16.mxu0 %v925_v20 }
  0x1b   :  { %52 = vperm.xlu0 %916, %v22_v19   ;;  %898 = vmatprep.subr.bf16.mxu1 %v925_v20  ;;  %p968_p4 = pnand %p967_p3, %p961_p0 }
  0x1d   :  { %872 = vmatpush3.bf16.msra.mxu0 %v925_v20  ;;  %906 = vmatpush3.bf16.msra.mxu1 %v925_v20 }
  0x1e   :  { %79 = vperm.xlu1 %917, %v31_v21   ;;  %873 = vmatprep.subr.bf16.mxu0 %v926_v23 }
  0x1f   :  { %76 = vperm.xlu0 %916, %v30_v22   ;;  %899 = vmatprep.subr.bf16.mxu1 %v926_v23 }
  0x21   :  { %874 = vmatpush3.bf16.msra.mxu0 %v926_v23  ;;  %907 = vmatpush3.bf16.msra.mxu1 %v926_v23 }
  0x22   :  { %875 = vmatprep.subr.bf16.mxu0 %v927_v24  ;;  %900 = vmatprep.subr.bf16.mxu1 %v927_v24 }
  0x25   :  { %876 = vmatpush3.bf16.msra.mxu0 %v927_v24  ;;  %908 = vmatpush3.bf16.msra.mxu1 %v927_v24 }
  0x81   :  { %v1091_v28 = vpop.permute.xlu1 %58 }
  0x82   :  { %v35_v29 = vpop.permute.xlu0 %34  ;;  %vm93_vm1 = vcmp.eq.s32.totalorder %v1091_v28, %v1086_v26 }
  0x83   :  { %vm85_vm0 = vcmp.eq.s32.totalorder %v35_v29, %v1086_v26  ;;  %v1171_v61 = vsel %vm93_vm1, %v1089_v27, 1073741824 }
  0x84   :  { %v1095_v30 = vsel %vm85_vm0, %v1089_v27, 1073741824  ;;  %v545_v6 = vshra.s32 %v1171_v61, 16 }
  0x85   :  { %v433_v31 = vshra.s32 %v1095_v30, 16  ;;  %v62_v32 = vpop.permute.xlu1 %61 }
  0x86   :  { %v38_v33 = vpop.permute.xlu0 %37  ;;  %vm94_vm2 = vcmp.eq.s32.totalorder %v62_v32, %v1086_v26  ;;  %v1216_v12 = vcvt.s32.f32 %v545_v6  ;;  %v986_v32 = vmov 5  }
  0x87   :  { %vm86_vm3 = vcmp.eq.s32.totalorder %v38_v33, %v1086_v26  ;;  %v1102_v34 = vcvt.s32.f32 %v433_v31  ;;  %vm821_vm4 = vmpackc.low %vm94_vm2, %vm93_vm1  ;;  %v1176_v62 = vsel %vm94_vm2, %v1089_v27, 1073741824  ;;  %918 = vset.pattern.permute.xlu1 %v986_v32  ;;  %919 = vset.pattern.permute.xlu0 %v986_v32  ;;  %v432_v33 = vand.u32 65535, %v1095_v30 }
  0x88   :  { %v1105_v35 = vsel %vm86_vm3, %v1089_v27, 1073741824  ;;  %885 = vmatprep.mubr.msk.bf16.mxu1 %vm821_vm4, %v985_v36  ;;  %vm813_vm5 = vmpackc.low %vm86_vm3, %vm85_vm0  ;;  %v559_v5 = vshra.s32 %v1176_v62, 16 }
  0x89   :  { %436 = vmin.xlane.f32.xlu0 %v1102_v34  ;;  %v447_v37 = vshra.s32 %v1105_v35, 16  ;;  %877 = vmatprep.mubr.msk.bf16.mxu0 %vm813_vm5, %v985_v36  ;;  %v44_v38 = vpop.permute.xlu1 %43 }
  0x8a   :  { %v41_v39 = vpop.permute.xlu0 %40  ;;  %vm88_vm6 = vcmp.eq.s32.totalorder %v44_v38, %v1086_v26  ;;  %v1214_v11 = vcvt.s32.f32 %v559_v5  ;;  %v434_v38 = vcvt.s32.f32 %v432_v33 }
  0x8b   :  { %vm87_vm7 = vcmp.eq.s32.totalorder %v41_v39, %v1086_v26  ;;  %v1118_v40 = vcvt.s32.f32 %v447_v37  ;;  %v1121_v41 = vsel %vm88_vm6, %v1089_v27, 1073741824 }
  0x8c   :  { %vm815_vm8 = vmpackc.low %vm88_vm6, %vm87_vm7  ;;  %v1124_v42 = vsel %vm87_vm7, %v1089_v27, 1073741824  ;;  %v475_v47 = vshra.s32 %v1121_v41, 16  ;;  %v474_v30 = vand.u32 65535, %v1121_v41 }
  0x8d   :  { %450 = vmin.xlane.f32.xlu1 %v1118_v40  ;;  %878 = vmatmul.mubr.msk.bf16.vlgmr.msra.gmra.mrb[0].mxu0 %vm815_vm8, %v985_v36  ;;  %v461_v43 = vshra.s32 %v1124_v42, 16  ;;  %v68_v44 = vpop.permute.xlu1 %67 }
  0x8e   :  { %v65_v45 = vpop.permute.xlu0 %64  ;;  %vm96_vm9 = vcmp.eq.s32.totalorder %v68_v44, %v1086_v26  ;;  %v1142_v50 = vcvt.s32.f32 %v475_v47 }
  0x8f   :  { %vm95_vm10 = vcmp.eq.s32.totalorder %v65_v45, %v1086_v26  ;;  %v1131_v46 = vcvt.s32.f32 %v461_v43  ;;  %v1200_v9 = vsel %vm96_vm9, %v1089_v27, 1073741824  ;;  %v460_v43 = vand.u32 65535, %v1124_v42 }
  0x90   :  { %vm823_vm11 = vmpackc.low %vm96_vm9, %vm95_vm10  ;;  %v1205_v10 = vsel %vm95_vm10, %v1089_v27, 1073741824  ;;  %v587_v13 = vshra.s32 %v1200_v9, 16 }
  0x91   :  { %464 = vmin.xlane.f32.xlu0 %v1131_v46  ;;  %886 = vmatmul.mubr.msk.bf16.vlgmr.msra.gmra.mrb[0].mxu1 %vm823_vm11, %v985_v36  ;;  %v50_v48 = vpop.permute.xlu1 %49  ;;  %v573_v14 = vshra.s32 %v1205_v10, 16 }
  0x92   :  { %v47_v49 = vpop.permute.xlu0 %46  ;;  %vm90_vm12 = vcmp.eq.s32.totalorder %v50_v48, %v1086_v26  ;;  %v1232_v17 = vcvt.s32.f32 %v587_v13  ;;  %v462_v48 = vcvt.s32.f32 %v460_v43 }
  0x93   :  { %vm89_vm13 = vcmp.eq.s32.totalorder %v47_v49, %v1086_v26  ;;  %v1145_v51 = vsel %vm90_vm12, %v1089_v27, 1073741824  ;;  %v1234_v18 = vcvt.s32.f32 %v573_v14 }
  0x94   :  { %vm817_vm14 = vmpackc.low %vm90_vm12, %vm89_vm13  ;;  %v1148_v52 = vsel %vm89_vm13, %v1089_v27, 1073741824  ;;  %v503_v53 = vshra.s32 %v1145_v51, 16  ;;  %v502_v42 = vand.u32 65535, %v1145_v51 }
  0x95   :  { %478 = vmin.xlane.f32.xlu0 %v1142_v50  ;;  %881 = vmatprep.mubr.msk.bf16.mxu0 %vm817_vm14, %v985_v36  ;;  %v489_v54 = vshra.s32 %v1148_v52, 16  ;;  %v74_v55 = vpop.permute.xlu1 %73  ;;  %v488_v49 = vand.u32 65535, %v1148_v52 }
  0x96   :  { %v71_v56 = vpop.permute.xlu0 %70  ;;  %vm98_vm15 = vcmp.eq.s32.totalorder %v74_v55, %v1086_v26  ;;  %v1156_v57 = vcvt.s32.f32 %v503_v53 }
  0x97   :  { %vm97_vm0 = vcmp.eq.s32.totalorder %v71_v56, %v1086_v26  ;;  %v1158_v58 = vcvt.s32.f32 %v489_v54  ;;  %v1223_v15 = vsel %vm98_vm15, %v1089_v27, 1073741824  ;;  %v476_v54 = vcvt.s32.f32 %v474_v30 }
  0x98   :  { %vm825_vm3 = vmpackc.low %vm98_vm15, %vm97_vm0  ;;  %v1228_v16 = vsel %vm97_vm0, %v1089_v27, 1073741824  ;;  %v615_v19 = vshra.s32 %v1223_v15, 16  ;;  %v490_v56 = vcvt.s32.f32 %v488_v49 }
  0x99   :  { %506 = vmin.xlane.f32.xlu0 %v1156_v57  ;;  %492 = vmin.xlane.f32.xlu1 %v1158_v58  ;;  %v56_v59 = vpop.permute.xlu1 %55  ;;  %v601_v20 = vshra.s32 %v1228_v16, 16 }
  0x9a   :  { %889 = vmatprep.mubr.msk.bf16.mxu1 %vm825_vm3, %v985_v36  ;;  %v53_v60 = vpop.permute.xlu0 %52  ;;  %vm92_vm4 = vcmp.eq.s32.totalorder %v56_v59, %v1086_v26  ;;  %v1250_v23 = vcvt.s32.f32 %v615_v19 }
  0x9b   :  { %vm91_vm5 = vcmp.eq.s32.totalorder %v53_v60, %v1086_v26  ;;  %v1181_v63 = vsel %vm92_vm4, %v1089_v27, 1073741824  ;;  %v1252_v24 = vcvt.s32.f32 %v601_v20  ;;  %v544_v60 = vand.u32 65535, %v1171_v61 }
  0x9c   :  { %vm819_vm6 = vmpackc.low %vm92_vm4, %vm91_vm5  ;;  %v1184_v0 = vsel %vm91_vm5, %v1089_v27, 1073741824  ;;  %v531_v1 = vshra.s32 %v1181_v63, 16  ;;  %v586_v61 = vand.u32 65535, %v1200_v9  ;;  %v614_v9 = vand.u32 65535, %v1223_v15 }
  0x9d   :  { %882 = vmatmul.mubr.msk.bf16.gmra.mrb[4].mxu0 %vm819_vm6, %v985_v36  ;;  %v517_v2 = vshra.s32 %v1184_v0, 16  ;;  %v80_v3 = vpop.permute.xlu1 %79  ;;  %v516_v59 = vand.u32 65535, %v1184_v0  ;;  %v546_v6 = vcvt.s32.f32 %v544_v60 }
  0x9e   :  { %v77_v4 = vpop.permute.xlu0 %76  ;;  %vm100_vm1 = vcmp.eq.s32.totalorder %v80_v3, %v1086_v26  ;;  %v1193_v7 = vcvt.s32.f32 %v531_v1  ;;  %v558_v1 = vand.u32 65535, %v1176_v62  ;;  %v572_v62 = vand.u32 65535, %v1205_v10 }
  0x9f   :  { %vm99_vm2 = vcmp.eq.s32.totalorder %v77_v4, %v1086_v26  ;;  %v1195_v8 = vcvt.s32.f32 %v517_v2  ;;  %v1241_v21 = vsel %vm100_vm1, %v1089_v27, 1073741824  ;;  %v600_v10 = vand.u32 65535, %v1228_v16 }
  0xa0   :  { %vm827_vm7 = vmpackc.low %vm100_vm1, %vm99_vm2  ;;  %534 = vmin.xlane.f32.xlu0 %v1193_v7  ;;  %v1246_v22 = vsel %vm99_vm2, %v1089_v27, 1073741824  ;;  %v643_v28 = vshra.s32 %v1241_v21, 16  ;;  %v560_v13 = vcvt.s32.f32 %v558_v1  ;;  %v574_v20 = vcvt.s32.f32 %v572_v62 }
  0xa1   :  { %520 = vmin.xlane.f32.xlu1 %v1195_v8  ;;  %890 = vmatmul.mubr.msk.bf16.gmra.mrb[4].mxu1 %vm827_vm7, %v985_v36  ;;  %v629_v29 = vshra.s32 %v1246_v22, 16  ;;  %v446_v36 = vand.u32 65535, %v1105_v35  ;;  %v602_v16 = vcvt.s32.f32 %v600_v10  ;;  %v616_v32 = vcvt.s32.f32 %v614_v9 }
  0xa2   :  { %v1258_v31 = vcvt.s32.f32 %v643_v28  ;;  %v588_v28 = vcvt.s32.f32 %v586_v61 }
  0xa3   :  { %v1260_v26 = vcvt.s32.f32 %v629_v29  ;;  %v448_v45 = vcvt.s32.f32 %v446_v36 }
  0xa4   :  { %562 = vmin.xlane.f32.xlu0 %v1214_v11 }
  0xa5   :  { %548 = vmin.xlane.f32.xlu1 %v1216_v12 }
  0xa8   :  { %590 = vmin.xlane.f32.xlu0 %v1232_v17 }
  0xa9   :  { %576 = vmin.xlane.f32.xlu1 %v1234_v18 }
  0xac   :  { %618 = vmin.xlane.f32.xlu0 %v1250_v23 }
  0xad   :  { %604 = vmin.xlane.f32.xlu1 %v1252_v24 }
  0xb0   :  { %646 = vmin.xlane.f32.xlu0 %v1258_v31 }
  0xb1   :  { %632 = vmin.xlane.f32.xlu1 %v1260_v26 }
 0x116   :  { %v1266_v37 = vpop.xlane.xlu0 %436 }
 0x117   :  { %vm438_vm8 = vcmp.eq.f32.partialorder %v1102_v34, %v1266_v37 }
 0x118   :  { %v439_v39 = vsel %vm438_vm8, %v434_v38, inf }
 0x119   :  { %440 = vmin.xlane.f32.xlu0 %v439_v39 }
 0x11a   :  { %v1271_v44 = vpop.xlane.xlu1 %450 }
 0x11b   :  { %vm452_vm9 = vcmp.eq.f32.partialorder %v1118_v40, %v1271_v44 }
 0x11c   :  { %v453_v47 = vsel %vm452_vm9, %v448_v45, inf  ;;  %vm739_vm9 = vcmp.eq.s32.totalorder %v1089_v27, 5 }
 0x11d   :  { %454 = vmin.xlane.f32.xlu1 %v453_v47 }
 0x11e   :  { %v1276_v35 = vpop.xlane.xlu0 %464 }
 0x11f   :  { %vm466_vm10 = vcmp.eq.f32.partialorder %v1131_v46, %v1276_v35  ;;  %v504_v46 = vcvt.s32.f32 %v502_v42 }
 0x120   :  { %v467_v34 = vsel %vm466_vm10, %v462_v48, inf }
 0x121   :  { %468 = vmin.xlane.f32.xlu0 %v467_v34 }
 0x122   :  { %v1282_v53 = vpop.xlane.xlu0 %478 }
 0x123   :  { %vm480_vm11 = vcmp.eq.f32.partialorder %v1142_v50, %v1282_v53  ;;  %v530_v50 = vand.u32 65535, %v1181_v63 }
 0x124   :  { %v481_v40 = vsel %vm480_vm11, %v476_v54, inf }
 0x125   :  { %482 = vmin.xlane.f32.xlu0 %v481_v40  ;;  %v532_v4 = vcvt.s32.f32 %v530_v50  ;;  %v628_v50 = vand.u32 65535, %v1246_v22 }
 0x126   :  { %v1286_v41 = vpop.xlane.xlu1 %492  ;;  %v1288_v55 = vpop.xlane.xlu0 %506 }
 0x127   :  { %vm494_vm12 = vcmp.eq.f32.partialorder %v1158_v58, %v1286_v41  ;;  %vm508_vm13 = vcmp.eq.f32.partialorder %v1156_v57, %v1288_v55  ;;  %v518_v58 = vcvt.s32.f32 %v516_v59  ;;  %v630_v60 = vcvt.s32.f32 %v628_v50 }
 0x128   :  { %v495_v51 = vsel %vm494_vm12, %v490_v56, inf  ;;  %v509_v52 = vsel %vm508_vm13, %v504_v46, inf  ;;  %v642_v56 = vand.u32 65535, %v1241_v21 }
 0x129   :  { %496 = vmin.xlane.f32.xlu1 %v495_v51  ;;  %510 = vmin.xlane.f32.xlu0 %v509_v52 }
 0x12a   :  { %v644_v51 = vcvt.s32.f32 %v642_v56 }
 0x12d   :  { %v1300_v3 = vpop.xlane.xlu0 %534 }
 0x12e   :  { %v1298_v2 = vpop.xlane.xlu1 %520  ;;  %vm536_vm15 = vcmp.eq.f32.partialorder %v1193_v7, %v1300_v3 }
 0x12f   :  { %vm522_vm14 = vcmp.eq.f32.partialorder %v1195_v8, %v1298_v2  ;;  %v537_v63 = vsel %vm536_vm15, %v532_v4, inf }
 0x130   :  { %v523_v57 = vsel %vm522_vm14, %v518_v58, inf  ;;  %538 = vmin.xlane.f32.xlu0 %v537_v63 }
 0x131   :  { %524 = vmin.xlane.f32.xlu1 %v523_v57  ;;  %v1310_v5 = vpop.xlane.xlu0 %562 }
 0x132   :  { %v1308_v0 = vpop.xlane.xlu1 %548  ;;  %vm564_vm3 = vcmp.eq.f32.partialorder %v1214_v11, %v1310_v5 }
 0x133   :  { %vm550_vm0 = vcmp.eq.f32.partialorder %v1216_v12, %v1308_v0  ;;  %v565_v8 = vsel %vm564_vm3, %v560_v13, inf  ;;  %v555_v50 = vcvt.f32.s32 %v1308_v0 }
 0x134   :  { %v551_v7 = vsel %vm550_vm0, %v546_v6, inf  ;;  %566 = vmin.xlane.f32.xlu0 %v565_v8  ;;  %v471_v8 = vcvt.f32.s32 %v1276_v35  ;;  %v457_v35 = vcvt.f32.s32 %v1271_v44  ;;  %v485_v44 = vcvt.f32.s32 %v1282_v53 }
 0x135   :  { %552 = vmin.xlane.f32.xlu1 %v551_v7  ;;  %v1320_v19 = vpop.xlane.xlu0 %590 }
 0x136   :  { %v1318_v14 = vpop.xlane.xlu1 %576  ;;  %vm592_vm5 = vcmp.eq.f32.partialorder %v1232_v17, %v1320_v19 }
 0x137   :  { %vm578_vm4 = vcmp.eq.f32.partialorder %v1234_v18, %v1318_v14  ;;  %v593_v12 = vsel %vm592_vm5, %v588_v28, inf  ;;  %v583_v56 = vcvt.f32.s32 %v1318_v14 }
 0x138   :  { %v579_v11 = vsel %vm578_vm4, %v574_v20, inf  ;;  %594 = vmin.xlane.f32.xlu0 %v593_v12  ;;  %v443_v20 = vcvt.f32.s32 %v1266_v37  ;;  %v1413_v12 = vshrl.u32 %v414_v25, 7 }
 0x139   :  { %580 = vmin.xlane.f32.xlu1 %v579_v11  ;;  %v1328_v15 = vpop.xlane.xlu0 %618  ;;  %v472_v11 = vshll.u32 %v471_v8, 16  ;;  %v458_v8 = vshll.u32 %v457_v35, 16 }
 0x13a   :  { %v1326_v29 = vpop.xlane.xlu1 %604  ;;  %vm620_vm1 = vcmp.eq.f32.partialorder %v1250_v23, %v1328_v15  ;;  %v659_v0 = vadd.s32 8, %v1413_v12  ;;  %v666_v53 = vadd.s32 64, %v1413_v12 }
 0x13b   :  { %vm606_vm6 = vcmp.eq.f32.partialorder %v1252_v24, %v1326_v29  ;;  %v621_v33 = vsel %vm620_vm1, %v616_v32, inf }
 0x13c   :  { %v607_v18 = vsel %vm606_vm6, %v602_v16, inf  ;;  %622 = vmin.xlane.f32.xlu0 %v621_v33  ;;  %v444_v33 = vshll.u32 %v443_v20, 16  ;;  %v668_v20 = vadd.s32 80, %v1413_v12 }
 0x13d   :  { %608 = vmin.xlane.f32.xlu1 %v607_v18  ;;  %v1383_v46 = vpop.xlane.xlu0 %646 }
 0x13e   :  { %vm648_vm2 = vcmp.eq.f32.partialorder %v1258_v31, %v1383_v46  ;;  %v1388_v59 = vpop.xlane.xlu1 %632 }
 0x13f   :  { %v649_v52 = vsel %vm648_vm2, %v644_v51, inf  ;;  %vm634_vm7 = vcmp.eq.f32.partialorder %v1260_v26, %v1388_v59  ;;  %v660_v51 = vadd.s32 16, %v1413_v12 }
 0x140   :  { %v635_v1 = vsel %vm634_vm7, %v630_v60, inf }
 0x160   :  { %v1334_v17 = vpop.f32.mrb[0].mxu0 }
 0x161   :  { %v1336_v36 = vpop.f32.mrb[1].mxu0  ;;  %314 = vperm.xlu1 %918, %v1334_v17  }
 0x162   :  { %v1339_v38 = vpop.f32.mrb[2].mxu0 }
 0x163   :  { %v1341_v39 = vpop.f32.mrb[3].mxu0 }
 0x164   :  { %v1343_v43 = vpop.f32.mrb[0].mxu1 }
 0x165   :  { %v1345_v24 = vpop.f32.mrb[1].mxu1  ;;  %304 = vperm.xlu1 %918, %v1336_v36   ;;  %354 = vperm.xlu0 %919, %v1343_v43  }
 0x166   :  { %v1349_v23 = vpop.f32.mrb[2].mxu1 }
 0x167   :  { %v1351_v45 = vpop.f32.mrb[3].mxu1 }
 0x169   :  { %344 = vperm.xlu1 %918, %v1345_v24   ;;  %309 = vperm.xlu0 %919, %v1341_v39  }
 0x16d   :  { %319 = vperm.xlu1 %918, %v1339_v38  }
 0x170   :  { %v1356_v47 = vpop.f32.mrb[4].mxu0 }
 0x171   :  { %v1358_v30 = vpop.f32.mrb[5].mxu0  ;;  %359 = vperm.xlu1 %918, %v1349_v23  }
 0x172   :  { %v1361_v48 = vpop.f32.mrb[6].mxu0 }
 0x173   :  { %v1363_v34 = vpop.f32.mrb[7].mxu0 }
 0x174   :  { %v1365_v42 = vpop.f32.mrb[4].mxu1 }
 0x175   :  { %349 = vperm.xlu1 %918, %v1351_v45   ;;  %v1368_v49 = vpop.f32.mrb[5].mxu1  ;;  %374 = vperm.xlu0 %919, %v1365_v42  }
 0x176   :  { %v1371_v54 = vpop.f32.mrb[6].mxu1 }
 0x177   :  { %v1373_v40 = vpop.f32.mrb[7].mxu1 }
 0x179   :  { %334 = vperm.xlu1 %918, %v1356_v47   ;;  %364 = vperm.xlu0 %919, %v1368_v49  }
 0x17d   :  { %324 = vperm.xlu1 %918, %v1358_v30  }
 0x181   :  { %339 = vperm.xlu1 %918, %v1361_v48  }
 0x185   :  { %379 = vperm.xlu1 %918, %v1371_v54  }
 0x189   :  { %329 = vperm.xlu1 %918, %v1363_v34  }
 0x18d   :  { %369 = vperm.xlu1 %918, %v1373_v40  }
 0x198   :  { %650 = vmin.xlane.f32.xlu0 %v649_v52 }
 0x1a6   :  { %v441_v58 = vpop.xlane.xlu0 %440 }
 0x1a7   :  { %v442_v16 = vcvt.f32.s32 %v441_v58 }
 0x1a9   :  { %v445_v60 = vadd.s32 %v444_v33, %v442_v16 }
 0x1aa   :  { %v455_v4 = vpop.xlane.xlu1 %454 }
 0x1ab   :  { %v456_v58 = vcvt.f32.s32 %v455_v4  ;;  %vm691_vm10 = vcmp.eq.s32.totalorder %v445_v60, %v1413_v12 }
 0x1ad   :  { %v459_v16 = vadd.s32 %v458_v8, %v456_v58 }
 0x1ae   :  { %v469_v21 = vpop.xlane.xlu0 %468 }
 0x1af   :  { %v470_v28 = vcvt.f32.s32 %v469_v21  ;;  %v584_v21 = vshll.u32 %v583_v56, 16  ;;  %vm692_vm12 = vcmp.eq.s32.totalorder %v459_v16, %v659_v0 }
 0x1b1   :  { %636 = vmin.xlane.f32.xlu1 %v635_v1  ;;  %v473_v52 = vadd.s32 %v472_v11, %v470_v28 }
 0x1b2   :  { %v1392_v57 = vpop.xlane.xlu0 %482 }
 0x1b3   :  { %vm693_vm8 = vcmp.eq.s32.totalorder %v473_v52, %v660_v51  ;;  %v486_v51 = vshll.u32 %v485_v44, 16 }
 0x1b6   :  { %v1394_v63 = vpop.xlane.xlu1 %496  ;;  %v1396_v31 = vpop.xlane.xlu0 %510 }
 0x1bd   :  { %v1400_v22 = vpop.xlane.xlu0 %538 }
 0x1be   :  { %v1398_v61 = vpop.xlane.xlu1 %524 }
 0x1c1   :  { %v1402_v6 = vpop.xlane.xlu0 %566 }
 0x1c2   :  { %v553_v62 = vpop.xlane.xlu1 %552 }
 0x1c5   :  { %v1404_v13 = vpop.xlane.xlu0 %594 }
 0x1c6   :  { %v581_v26 = vpop.xlane.xlu1 %580  ;;  %v596_v8 = vcvt.f32.s32 %v1404_v13 }
 0x1c7   :  { %v582_v37 = vcvt.f32.s32 %v581_v26  ;;  %v556_v26 = vshll.u32 %v555_v50, 16 }
 0x1c9   :  { %v1409_v9 = vpop.xlane.xlu0 %622  ;;  %v585_v28 = vadd.s32 %v584_v21, %v582_v37 }
 0x1ca   :  { %v1406_v7 = vpop.xlane.xlu1 %608 }
 0x1cb   :  { %vm701_vm11 = vcmp.eq.s32.totalorder %v585_v28, %v668_v20  ;;  %v669_v20 = vadd.s32 88, %v1413_v12 }
 0x1e0   :  { %v315_v10 = vpop.permute.xlu1 %314 }
 0x1e1   :  { %928 = vrcp.f32 %v315_v10  ;;  %v554_v10 = vcvt.f32.s32 %v553_v62 }
 0x1e3   :  { %v557_v33 = vadd.s32 %v556_v26, %v554_v10  ;;  %v569_v10 = vcvt.f32.s32 %v1310_v5 }
 0x1e4   :  { %v305_v32 = vpop.permute.xlu1 %304  ;;  %v355_v18 = vpop.permute.xlu0 %354 }
 0x1e5   :  { %930 = vrcp.f32 %v305_v32  ;;  %v987_v32 = vmov 0.0   ;;  %vm699_vm13 = vcmp.eq.s32.totalorder %v557_v33, %v666_v53  ;;  %v570_v53 = vshll.u32 %v569_v10, 16 }
 0x1e6   :  { %932 = vrcp.f32 %v355_v18  ;;  %v831_v62 = vsel %vm693_vm8, 1.0, %v987_v32  ;;  %v484_v18 = vcvt.f32.s32 %v1392_v57  ;;  %v829_v37 = vsel %vm691_vm10, 1.0, %v987_v32 }
 0x1e7   :  { %v661_v57 = vadd.s32 24, %v1413_v12  ;;  %v839_v58 = vsel %vm701_vm11, 1.0, %v987_v32  ;;  %v837_v26 = vsel %vm699_vm13, 1.0, %v987_v32  ;;  %v611_v33 = vcvt.f32.s32 %v1326_v29 }
 0x1e8   :  { %v345_v1 = vpop.permute.xlu1 %344  ;;  %v310_v25 = vpop.permute.xlu0 %309 }
 0x1e9   :  { %934 = vrcp.f32 %v345_v1 }
 0x1ea   :  { %936 = vrcp.f32 %v310_v25  ;;  %v487_v25 = vadd.s32 %v486_v51, %v484_v18  ;;  %v527_v18 = vcvt.f32.s32 %v1298_v2  ;;  %v667_v51 = vadd.s32 72, %v1413_v12 }
 0x1eb   :  { %v929_v14 = vpop.eup %928 }
 0x1ec   :  { %v387_v4 = vmul.f32 %v929_v14, %v1334_v17  ;;  %v320_v11 = vpop.permute.xlu1 %319  ;;  %v597_v17 = vcvt.f32.s32 %v1320_v19  ;;  %vm694_vm14 = vcmp.eq.s32.totalorder %v487_v25, %v661_v57  ;;  %v528_v57 = vshll.u32 %v527_v18, 16 }
 0x1ed   :  { %938 = vrcp.f32 %v320_v11  ;;  %v664_v25 = vadd.s32 48, %v1413_v12 }
 0x1ee   :  { %v742_v56 = vsel %vm739_vm9, %v831_v62, %v387_v4  ;;  %v598_v44 = vshll.u32 %v597_v17, 16  ;;  %v568_v4 = vcvt.f32.s32 %v1402_v6  ;;  %v832_v6 = vsel %vm694_vm14, 1.0, %v987_v32 }
 0x1ef   :  { %v931_v35 = vpop.eup %930  ;;  %758 = vst [vmem:[#allocation2 + $0x10] sm:$0xff] %v742_v56 }
 0x1f0   :  { %v933_v52 = vpop.eup %932  ;;  %v383_v50 = vmul.f32 %v931_v35, %v1336_v36  ;;  %v360_v1 = vpop.permute.xlu1 %359  ;;  %v599_v11 = vadd.s32 %v598_v44, %v596_v8  ;;  %v526_v35 = vcvt.f32.s32 %v1398_v61  ;;  %v571_v17 = vadd.s32 %v570_v53, %v568_v4 }
 0x1f1   :  { %v403_v21 = vmul.f32 %v933_v52, %v1343_v43  ;;  %940 = vrcp.f32 %v360_v1  ;;  %v830_v43 = vsel %vm692_vm12, 1.0, %v987_v32  ;;  %v612_v1 = vshll.u32 %v611_v33, 16 }
 0x1f2   :  { %v740_v19 = vsel %vm739_vm9, %v829_v37, %v383_v50  ;;  %vm702_vm15 = vcmp.eq.s32.totalorder %v599_v11, %v669_v20  ;;  %v610_v37 = vcvt.f32.s32 %v1406_v7  ;;  %v529_v8 = vadd.s32 %v528_v57, %v526_v35 }
 0x1f3   :  { %v935_v60 = vpop.eup %934  ;;  %756 = vst [vmem:[#allocation2] sm:$0xff] %v740_v19  ;;  %v750_v36 = vsel %vm739_vm9, %v839_v58, %v403_v21  ;;  %v840_v21 = vsel %vm702_vm15, 1.0, %v987_v32  ;;  %v498_v58 = vcvt.f32.s32 %v1394_v63  ;;  %vm700_vm0 = vcmp.eq.s32.totalorder %v571_v17, %v667_v51 }
 0x1f4   :  { %v937_v14 = vpop.eup %936  ;;  %766 = vst [vmem:[#allocation2 + $0x50] sm:$0xff] %v750_v36  ;;  %v399_v28 = vmul.f32 %v935_v60, %v1345_v24  ;;  %v350_v13 = vpop.permute.xlu1 %349  ;;  %v613_v60 = vadd.s32 %v612_v1, %v610_v37  ;;  %v541_v36 = vcvt.f32.s32 %v1300_v3  ;;  %v838_v63 = vsel %vm700_vm0, 1.0, %v987_v32 }
 0x1f5   :  { %v385_v5 = vmul.f32 %v937_v14, %v1341_v39  ;;  %942 = vrcp.f32 %v350_v13  ;;  %v375_v0 = vpop.permute.xlu0 %374  ;;  %vm697_vm3 = vcmp.eq.s32.totalorder %v529_v8, %v664_v25  ;;  %v540_v13 = vcvt.f32.s32 %v1400_v22 }
 0x1f6   :  { %v748_v16 = vsel %vm739_vm9, %v837_v26, %v399_v28  ;;  %944 = vrcp.f32 %v375_v0  ;;  %v835_v11 = vsel %vm697_vm3, 1.0, %v987_v32  ;;  %v671_v57 = vadd.s32 104, %v1413_v12 }
 0x1f7   :  { %v939_v62 = vpop.eup %938  ;;  %764 = vst [vmem:[#allocation2 + $0x40] sm:$0xff] %v748_v16  ;;  %v741_v24 = vsel %vm739_vm9, %v830_v43, %v385_v5  ;;  %v662_v43 = vadd.s32 32, %v1413_v12  ;;  %v653_v8 = vcvt.f32.s32 %v1383_v46 }
 0x1f8   :  { %757 = vst [vmem:[#allocation2 + $0x8] sm:$0xff] %v741_v24  ;;  %v389_v39 = vmul.f32 %v939_v62, %v1339_v38  ;;  %v335_v56 = vpop.permute.xlu1 %334  ;;  %v499_v38 = vcvt.f32.s32 %v1286_v41  ;;  %v670_v41 = vadd.s32 96, %v1413_v12 }
 0x1f9   :  { %946 = vrcp.f32 %v335_v56  ;;  %v365_v52 = vpop.permute.xlu0 %364  ;;  %v512_v56 = vcvt.f32.s32 %v1396_v31  ;;  %v624_v31 = vcvt.f32.s32 %v1409_v9 }
 0x1fa   :  { %v743_v2 = vsel %vm739_vm9, %v832_v6, %v389_v39  ;;  %948 = vrcp.f32 %v365_v52  ;;  %v500_v10 = vshll.u32 %v499_v38, 16  ;;  %vm703_vm4 = vcmp.eq.s32.totalorder %v613_v60, %v670_v41 }
 0x1fb   :  { %v941_v29 = vpop.eup %940  ;;  %759 = vst [vmem:[#allocation2 + $0x18] sm:$0xff] %v743_v2  ;;  %v841_v22 = vsel %vm703_vm4, 1.0, %v987_v32  ;;  %v625_v52 = vcvt.f32.s32 %v1328_v15  ;;  %v663_v2 = vadd.s32 40, %v1413_v12 }
 0x1fc   :  { %v405_v50 = vmul.f32 %v941_v29, %v1349_v23  ;;  %v325_v61 = vpop.permute.xlu1 %324  ;;  %v501_v28 = vadd.s32 %v500_v10, %v498_v58 }
 0x1fd   :  { %950 = vrcp.f32 %v325_v61  ;;  %v626_v38 = vshll.u32 %v625_v52, 16 }
 0x1fe   :  { %v751_v7 = vsel %vm739_vm9, %v840_v21, %v405_v50  ;;  %vm695_vm5 = vcmp.eq.s32.totalorder %v501_v28, %v662_v43  ;;  %v672_v43 = vadd.s32 112, %v1413_v12 }
 0x1ff   :  { %v943_v19 = vpop.eup %942  ;;  %767 = vst [vmem:[#allocation2 + $0x58] sm:$0xff] %v751_v7  ;;  %v627_v15 = vadd.s32 %v626_v38, %v624_v31  ;;  %v654_v7 = vshll.u32 %v653_v8, 16 }
 0x200   :  { %v945_v23 = vpop.eup %944  ;;  %v401_v14 = vmul.f32 %v943_v19, %v1351_v45  ;;  %v340_v44 = vpop.permute.xlu1 %339  ;;  %v542_v45 = vshll.u32 %v541_v36, 16  ;;  %v673_v19 = vadd.s32 120, %v1413_v12 }
 0x201   :  { %952 = vrcp.f32 %v340_v44  ;;  %v1478_v20 = vmul.f32 %v945_v23, %v1365_v42  ;;  %v665_v42 = vadd.s32 56, %v1413_v12  ;;  %vm704_vm2 = vcmp.eq.s32.totalorder %v627_v15, %v671_v57 }
 0x202   :  { %v749_v26 = vsel %vm739_vm9, %v838_v63, %v401_v14  ;;  %v543_v62 = vadd.s32 %v542_v45, %v540_v13  ;;  %v842_v21 = vsel %vm704_vm2, 1.0, %v987_v32  ;;  %v639_v14 = vcvt.f32.s32 %v1388_v59 }
 0x203   :  { %v947_v5 = vpop.eup %946  ;;  %765 = vst [vmem:[#allocation2 + $0x48] sm:$0xff] %v749_v26 }
 0x204   :  { %v949_v3 = vpop.eup %948  ;;  %v395_v0 = vmul.f32 %v947_v5, %v1356_v47  ;;  %v380_v4 = vpop.permute.xlu1 %379  ;;  %v513_v47 = vcvt.f32.s32 %v1288_v55  ;;  %vm698_vm6 = vcmp.eq.s32.totalorder %v543_v62, %v665_v42  ;;  %v640_v46 = vshll.u32 %v639_v14, 16 }
 0x205   :  { %v407_v16 = vmul.f32 %v949_v3, %v1368_v49  ;;  %v833_v49 = vsel %vm695_vm5, 1.0, %v987_v32 }
 0x206   :  { %v746_v24 = vsel %vm739_vm9, %v835_v11, %v395_v0  ;;  %v514_v51 = vshll.u32 %v513_v47, 16 }
 0x207   :  { %v951_v18 = vpop.eup %950  ;;  %762 = vst [vmem:[#allocation2 + $0x30] sm:$0xff] %v746_v24  ;;  %v752_v53 = vsel %vm739_vm9, %v841_v22, %v407_v16 }
 0x208   :  { %768 = vst [vmem:[#allocation2 + $0x60] sm:$0xff] %v752_v53  ;;  %v391_v33 = vmul.f32 %v951_v18, %v1358_v30  ;;  %v330_v39 = vpop.permute.xlu1 %329  ;;  %v836_v30 = vsel %vm698_vm6, 1.0, %v987_v32  ;;  %v515_v29 = vadd.s32 %v514_v51, %v512_v56 }
 0x209   :  { %954 = vrcp.f32 %v330_v39 }
 0x20a   :  { %v744_v6 = vsel %vm739_vm9, %v833_v49, %v391_v33  ;;  %vm696_vm1 = vcmp.eq.s32.totalorder %v515_v29, %v663_v2 }
 0x20b   :  { %v953_v35 = vpop.eup %952  ;;  %760 = vst [vmem:[#allocation2 + $0x20] sm:$0xff] %v744_v6  ;;  %v834_v61 = vsel %vm696_vm1, 1.0, %v987_v32 }
 0x20c   :  { %v397_v55 = vmul.f32 %v953_v35, %v1361_v48  ;;  %v370_v17 = vpop.permute.xlu1 %369 }
 0x20d   :  { %956 = vrcp.f32 %v370_v17 }
 0x20e   :  { %v747_v37 = vsel %vm739_vm9, %v836_v30, %v397_v55  ;;  %958 = vrcp.f32 %v380_v4 }
 0x20f   :  { %763 = vst [vmem:[#allocation2 + $0x38] sm:$0xff] %v747_v37 }
 0x213   :  { %v955_v50 = vpop.eup %954 }
 0x214   :  { %v393_v48 = vmul.f32 %v955_v50, %v1363_v34 }
 0x216   :  { %v745_v1 = vsel %vm739_vm9, %v834_v61, %v393_v48 }
 0x217   :  { %v957_v25 = vpop.eup %956  ;;  %761 = vst [vmem:[#allocation2 + $0x28] sm:$0xff] %v745_v1 }
 0x218   :  { %v409_v9 = vmul.f32 %v957_v25, %v1373_v40  ;;  %v959_v60 = vpop.eup %958 }
 0x219   :  { %v413_v10 = vmul.f32 %v959_v60, %v1371_v54 }
 0x21a   :  { %v753_v58 = vsel %vm739_vm9, %v842_v21, %v409_v9 }
 0x21b   :  { %769 = vst [vmem:[#allocation2 + $0x68] sm:$0xff] %v753_v58 }
 0x225   :  { %v651_v34 = vpop.xlane.xlu0 %650 }
 0x226   :  { %v652_v41 = vcvt.f32.s32 %v651_v34 }
 0x228   :  { %v655_v23 = vadd.s32 %v654_v7, %v652_v41 }
 0x22a   :  { %vm706_vm7 = vcmp.eq.s32.totalorder %v655_v23, %v673_v19 }
 0x22b   :  { %v844_v40 = vsel %vm706_vm7, 1.0, %v987_v32 }
 0x22c   :  { %v755_v36 = vsel %vm739_vm9, %v844_v40, %v413_v10 }
 0x22d   :  { %771 = vst [vmem:[#allocation2 + $0x78] sm:$0xff] %v755_v36 }
 0x23e   :  { %v637_v44 = vpop.xlane.xlu1 %636 }
 0x23f   :  { %v638_v63 = vcvt.f32.s32 %v637_v44 }
 0x241   :  { %v641_v28 = vadd.s32 %v640_v46, %v638_v63 }
 0x243   :  { %vm705_vm8 = vcmp.eq.s32.totalorder %v641_v28, %v672_v43 }
 0x244   :  { %v843_v54 = vsel %vm705_vm8, 1.0, %v987_v32 }
 0x245   :  { %v754_v13 = vsel %vm739_vm9, %v843_v54, %v1478_v20 }
 0x246   :  { %770 = vst [vmem:[#allocation2 + $0x70] sm:$0xff] %v754_v13 }
 0x247   :  { %971 = shalt.err (!%p968_p4)
}
 0x248   :  { %s972_s10 = scalar_lea.hbm %s1541_s3, 2048 }
 0x249   :  { %p973_p5 = scmp.ne.s32.totalorder %s1541_s3, %s972_s10  ;;  %p976_p6 = scmp.lt.u32.totalorder %s972_s10, %s1541_s3 }
 0x24b   :  { %p978_p7 = pnand %p976_p6, %p973_p5 }
 0x24d   :  { %981 = shalt.err (!%p978_p7)
}
 0x24e   :  { %s989_s15 = smov 128   ;;  %s990_s16 = smov 8  }
 0x24f   :  { %783 = dma.vmem_to_hbm [thread:$0]  %s778_s2, 2048, %s1541_s3, [#allocation3], %s989_s15, %s989_s15, %s990_s16  }
 0x250   :  { %982 = dma.done.wait [#allocation3], 2048  }
 0x251   :  { %983 = vsyncadd [#allocation3], 4294965248 }
 0x252   :  { %787 = vsyncpa [#allocation3], 1 }

</bundles_post_ra>
